<compile_context>
chip_gen: v7x
topology: tpu7x:2x2x1
jax: 0.10.0
libtpu: 0.0.40
codegen_flags: <defaults>
</compile_context>

<pallas_src>
import functools
import numpy as np
import jax
import jax.numpy as jnp
from jax import lax
from jax.experimental import pallas as pl
from jax.experimental.pallas import tpu as pltpu


def _round_up(a, b):
    return ((a + b - 1) // b) * b


def _pinn_tile_kernel(bc_ref, x_ref, w0_ref, b0_ref, wh_ref, bh_ref,
                      wo_ref, bo_ref, out_ref, *,
                      n_hidden_layers, lb, ub, apply_bc):
    # x_ref: (1, TN) -- one batch tile, collocation points on the lane axis.
    x = x_ref[...]

    # First layer: in_features == 1, so the "matmul" is an outer product.
    # Do it on the VPU (broadcast multiply) instead of wasting an MXU pass.
    h = jnp.tanh(w0_ref[...] * x + b0_ref[...])                    # (H, TN)

    # Hidden layers: (H,H) @ (H,TN) on the MXU, tanh on the EUP (bottleneck).
    for l in range(n_hidden_layers):                               # static unroll
        h = jnp.tanh(
            jnp.dot(wh_ref[l], h, preferred_element_type=jnp.float32)
            + bh_ref[l])                                           # (H, TN)

    y = (jnp.dot(wo_ref[...], h, preferred_element_type=jnp.float32)
         + bo_ref[...])                                            # (2, TN)

    if apply_bc:
        # bc_ref (SMEM, 4 scalars) = [dl0, dl1, du0, du1]
        # where dl = yl - fwd(xl), du = yu - fwd(xu).
        inv = 1.0 / (ub - lb)
        tu = (ub - x) * inv                                        # (1, TN)
        tl = (x - lb) * inv                                        # (1, TN)
        row = lax.broadcasted_iota(jnp.int32, y.shape, 0)          # output-row id
        dl = jnp.where(row == 0, bc_ref[0], bc_ref[1])             # (2, TN)
        du = jnp.where(row == 0, bc_ref[2], bc_ref[3])             # (2, TN)
        y = y + tu * dl + tl * du

    out_ref[...] = y                                               # lane-dense store


def _make_pinn_call(n_pad, tn, H, L, *, n_hidden_layers, lb, ub, apply_bc):
    kernel = functools.partial(
        _pinn_tile_kernel, n_hidden_layers=n_hidden_layers,
        lb=float(lb), ub=float(ub), apply_bc=apply_bc)
    in_specs = [
        pl.BlockSpec(memory_space=pltpu.MemorySpace.SMEM),   # bc residual scalars
        pl.BlockSpec((1, tn), lambda i: (0, i)),             # x tile (lanes=batch)
        pl.BlockSpec((H, 1), lambda i: (0, 0)),              # w0^T (resident)
        pl.BlockSpec((H, 1), lambda i: (0, 0)),              # b0^T
        pl.BlockSpec((L, H, H), lambda i: (0, 0, 0)),        # hidden W^T stack
        pl.BlockSpec((L, H, 1), lambda i: (0, 0, 0)),        # hidden b^T stack
        pl.BlockSpec((2, H), lambda i: (0, 0)),              # wo^T
        pl.BlockSpec((2, 1), lambda i: (0, 0)),              # bo^T
    ]
    return pl.pallas_call(
        kernel,
        out_shape=jax.ShapeDtypeStruct((2, n_pad), jnp.float32),
        grid=(n_pad // tn,),
        in_specs=in_specs,
        out_specs=pl.BlockSpec((2, tn), lambda i: (0, i)),
        compiler_params=pltpu.CompilerParams(
            dimension_semantics=("parallel",)),
    )


def pinn_forward(x, yl, yu, params, n_hidden_layers, *, lb, ub, bc_flag,
                 tile_n=512):
    """x: (N, 1) f32. Returns (N, 2) f32, same math as the PyTorch forward."""
    w0, b0, wh, bh, wo, bo = params            # reference (batch-row) layout
    H = w0.shape[1]
    L = wh.shape[0]

    # Feature-major weights for the kernel: y_t = W^T @ h_t (+ b^T).
    w0t = jnp.transpose(w0)                    # (H, 1)
    b0t = jnp.transpose(b0)                    # (H, 1)
    wht = jnp.swapaxes(wh, 1, 2)               # (L, H, H)
    bht = jnp.swapaxes(bh, 1, 2)               # (L, H, 1)
    wot = jnp.transpose(wo)                    # (2, H)
    bot = jnp.transpose(bo)                    # (2, 1)

    N = x.shape[0]
    tn = min(tile_n, _round_up(N, 128))        # lane tile, multiple of 128
    n_pad = _round_up(N, tn)
    xt = jnp.zeros((1, n_pad), jnp.float32).at[0, :N].set(x[:, 0])

    bc = jnp.zeros((4,), jnp.float32)
    if int(bc_flag) == 1:
        # Boundary pass: same Pallas kernel on one 128-lane tile holding
        # [xl, xu] in lanes 0/1; only the 4 residual scalars leave it.
        xb = (jnp.zeros((1, 128), jnp.float32)
              .at[0, 0].set(lb).at[0, 1].set(ub))
        yb = _make_pinn_call(128, 128, H, L, n_hidden_layers=n_hidden_layers,
                             lb=lb, ub=ub, apply_bc=False)(
            bc, xb, w0t, b0t, wht, bht, wot, bot)          # (2, 128)
        dl = yl.reshape(2) - yb[:, 0]                      # yl - fwd(xl)
        du = yu.reshape(2) - yb[:, 1]                      # yu - fwd(xu)
        bc = jnp.concatenate([dl, du])                     # (4,)

    yt = _make_pinn_call(n_pad, tn, H, L, n_hidden_layers=n_hidden_layers,
                         lb=lb, ub=ub, apply_bc=(int(bc_flag) == 1))(
        bc, xt, w0t, b0t, wht, bht, wot, bot)              # (2, n_pad)
    return jnp.transpose(yt[:, :N])                        # (N, 2)


def init_params(key, n_hidden, n_layers):
    """Deterministic PyTorch-style Linear init (uniform +-1/sqrt(fan_in))."""
    n_hidden_layers = n_layers - 3
    ks = jax.random.split(key, 6)

    def unif(k, shape, fan_in):
        bound = 1.0 / np.sqrt(fan_in)
        return jax.random.uniform(k, shape, jnp.float32, -bound, bound)

    w0 = unif(ks[0], (1, n_hidden), 1)
    b0 = unif(ks[1], (1, n_hidden), 1)
    L = max(n_hidden_layers, 1)
    wh = unif(ks[2], (L, n_hidden, n_hidden), n_hidden)
    bh = unif(ks[3], (L, 1, n_hidden), n_hidden)
    if n_hidden_layers == 0:                   # dummy (unused) hidden stack
        wh = wh * 0.0
        bh = bh * 0.0
    wo = unif(ks[4], (n_hidden, 2), n_hidden)
    bo = unif(ks[5], (1, 2), n_hidden)
    return (w0, b0, wh, bh, wo, bo), n_hidden_layers


def reference_forward(x, xl, xu, yl, yu, params, n_hidden_layers, lb, ub, bc_flag):
    w0, b0, wh, bh, wo, bo = params

    def mlp(z):
        h = jnp.tanh(z @ w0 + b0)
        for l in range(n_hidden_layers):
            h = jnp.tanh(h @ wh[l] + bh[l])
        return h @ wo + bo

    y = mlp(x)
    if bc_flag == 1:
        y_hat_l = mlp(xl)
        y_hat_u = mlp(xu)
        y = (y + (ub - x) / (ub - lb) * (yl - y_hat_l)
               + (x - lb) / (ub - lb) * (yu - y_hat_u))
    return y


if __name__ == "__main__":
    # Module config (small, consistent with the PyTorch __init__ / forward)
    n_hidden = 32
    n_layers = 5          # -> 2 hidden Linear+Tanh blocks
    lb, ub = 0.0, 1.0
    BC = (1, [0.0, 1.0], [1.0, 0.0])   # (flag, yl pair, yu pair)
    batch = 8

    key = jax.random.PRNGKey(0)
    kp, kx = jax.random.split(key)
    params, n_hidden_layers = init_params(kp, n_hidden, n_layers)

    # inputs
    x = (ub - lb) * jax.random.uniform(kx, (batch, 1), jnp.float32) + lb
    xl = jnp.full((1, 1), lb, jnp.float32)              # self.xl = lb.view(-1,1)
    xu = jnp.full((1, 1), ub, jnp.float32)              # self.xu = ub.view(-1,1)
    yl = jnp.array(BC[1], jnp.float32).reshape(-1, 2)   # (1, 2)
    yu = jnp.array(BC[2], jnp.float32).reshape(-1, 2)   # (1, 2)

    out = pinn_forward(x, yl, yu, params, n_hidden_layers,
                       lb=lb, ub=ub, bc_flag=BC[0])
    out = jax.block_until_ready(out)

    ref = reference_forward(x, xl, xu, yl, yu, params, n_hidden_layers,
                            lb, ub, BC[0])
    assert out.shape == (batch, 2)
    np.testing.assert_allclose(np.asarray(out), np.asarray(ref),
                               rtol=1e-4, atol=1e-5)
    print("KERNEL_OK")
</pallas_src>

<mosaic_0001>
module attributes {stable_mosaic.version = 11 : i64} {
  func.func @_pinn_tile_kernel(%arg0: i32, %arg1: memref<4xf32, #tpu.memory_space<smem>>, %arg2: memref<1x128xf32, #tpu.memory_space<vmem>>, %arg3: memref<32x1xf32, #tpu.memory_space<vmem>>, %arg4: memref<32x1xf32, #tpu.memory_space<vmem>>, %arg5: memref<2x32x32xf32, #tpu.memory_space<vmem>>, %arg6: memref<2x32x1xf32, #tpu.memory_space<vmem>>, %arg7: memref<2x32xf32, #tpu.memory_space<vmem>>, %arg8: memref<2x1xf32, #tpu.memory_space<vmem>>, %arg9: memref<2x128xf32, #tpu.memory_space<vmem>>) attributes {dimension_semantics = [#tpu.dimension_semantics<parallel>], iteration_bounds = array<i64: 1>, scalar_prefetch = 0 : i64, scratch_operands = 0 : i64, tpu.core_type = #tpu.core_type<tc>, window_params = [{transform_indices = @transform_0, window_bounds = array<i64: 4>}, {transform_indices = @transform_1, window_bounds = array<i64: 1, 128>}, {pipeline_mode = #tpu.pipeline_mode<synchronous>, transform_indices = @transform_2, window_bounds = array<i64: 32, 1>}, {pipeline_mode = #tpu.pipeline_mode<synchronous>, transform_indices = @transform_3, window_bounds = array<i64: 32, 1>}, {pipeline_mode = #tpu.pipeline_mode<synchronous>, transform_indices = @transform_4, window_bounds = array<i64: 2, 32, 32>}, {pipeline_mode = #tpu.pipeline_mode<synchronous>, transform_indices = @transform_5, window_bounds = array<i64: 2, 32, 1>}, {pipeline_mode = #tpu.pipeline_mode<synchronous>, transform_indices = @transform_6, window_bounds = array<i64: 2, 32>}, {pipeline_mode = #tpu.pipeline_mode<synchronous>, transform_indices = @transform_7, window_bounds = array<i64: 2, 1>}, {transform_indices = @transform_8, window_bounds = array<i64: 2, 128>}]} {
    %c0 = arith.constant 0 : index
    %c0_0 = arith.constant 0 : index
    %0 = vector.load %arg2[%c0, %c0_0] : memref<1x128xf32, #tpu.memory_space<vmem>>, vector<1x128xf32>
    %c0_1 = arith.constant 0 : index
    %c0_2 = arith.constant 0 : index
    %1 = vector.load %arg3[%c0_1, %c0_2] : memref<32x1xf32, #tpu.memory_space<vmem>>, vector<32x1xf32>
    %2 = vector.broadcast %1 : vector<32x1xf32> to vector<32x128xf32>
    %3 = vector.broadcast %0 : vector<1x128xf32> to vector<32x128xf32>
    %4 = arith.mulf %2, %3 : vector<32x128xf32>
    %c0_3 = arith.constant 0 : index
    %c0_4 = arith.constant 0 : index
    %5 = vector.load %arg4[%c0_3, %c0_4] : memref<32x1xf32, #tpu.memory_space<vmem>>, vector<32x1xf32>
    %6 = vector.broadcast %5 : vector<32x1xf32> to vector<32x128xf32>
    %7 = arith.addf %4, %6 : vector<32x128xf32>
    %8 = math.tanh %7 : vector<32x128xf32>
    %c0_5 = arith.constant 0 : index
    %c0_6 = arith.constant 0 : index
    %c0_7 = arith.constant 0 : index
    %9 = vector.load %arg5[%c0_5, %c0_6, %c0_7] : memref<2x32x32xf32, #tpu.memory_space<vmem>>, vector<1x32x32xf32>
    %10 = vector.shape_cast %9 : vector<1x32x32xf32> to vector<32x32xf32>
    %cst = arith.constant dense<0.000000e+00> : vector<32x128xf32>
    %11 = tpu.matmul %10, %8, %cst {dimension_numbers = #tpu.dot_dimension_numbers<[1], [0], [0], [1], [0, 0, 1, 1], [], []>} : vector<32x32xf32>, vector<32x128xf32>, vector<32x128xf32> -> vector<32x128xf32>
    %c0_8 = arith.constant 0 : index
    %c0_9 = arith.constant 0 : index
    %c0_10 = arith.constant 0 : index
    %12 = vector.load %arg6[%c0_8, %c0_9, %c0_10] : memref<2x32x1xf32, #tpu.memory_space<vmem>>, vector<1x32x1xf32>
    %13 = vector.shape_cast %12 : vector<1x32x1xf32> to vector<32x1xf32>
    %14 = vector.broadcast %13 : vector<32x1xf32> to vector<32x128xf32>
    %15 = arith.addf %11, %14 : vector<32x128xf32>
    %16 = math.tanh %15 : vector<32x128xf32>
    %c1 = arith.constant 1 : index
    %c0_11 = arith.constant 0 : index
    %c0_12 = arith.constant 0 : index
    %17 = vector.load %arg5[%c1, %c0_11, %c0_12] : memref<2x32x32xf32, #tpu.memory_space<vmem>>, vector<1x32x32xf32>
    %18 = vector.shape_cast %17 : vector<1x32x32xf32> to vector<32x32xf32>
    %cst_13 = arith.constant dense<0.000000e+00> : vector<32x128xf32>
    %19 = tpu.matmul %18, %16, %cst_13 {dimension_numbers = #tpu.dot_dimension_numbers<[1], [0], [0], [1], [0, 0, 1, 1], [], []>} : vector<32x32xf32>, vector<32x128xf32>, vector<32x128xf32> -> vector<32x128xf32>
    %c1_14 = arith.constant 1 : index
    %c0_15 = arith.constant 0 : index
    %c0_16 = arith.constant 0 : index
    %20 = vector.load %arg6[%c1_14, %c0_15, %c0_16] : memref<2x32x1xf32, #tpu.memory_space<vmem>>, vector<1x32x1xf32>
    %21 = vector.shape_cast %20 : vector<1x32x1xf32> to vector<32x1xf32>
    %22 = vector.broadcast %21 : vector<32x1xf32> to vector<32x128xf32>
    %23 = arith.addf %19, %22 : vector<32x128xf32>
    %24 = math.tanh %23 : vector<32x128xf32>
    %c0_17 = arith.constant 0 : index
    %c0_18 = arith.constant 0 : index
    %25 = vector.load %arg7[%c0_17, %c0_18] : memref<2x32xf32, #tpu.memory_space<vmem>>, vector<2x32xf32>
    %cst_19 = arith.constant dense<0.000000e+00> : vector<2x128xf32>
    %26 = tpu.matmul %25, %24, %cst_19 {dimension_numbers = #tpu.dot_dimension_numbers<[1], [0], [0], [1], [0, 0, 1, 1], [], []>} : vector<2x32xf32>, vector<32x128xf32>, vector<2x128xf32> -> vector<2x128xf32>
    %c0_20 = arith.constant 0 : index
    %c0_21 = arith.constant 0 : index
    %27 = vector.load %arg8[%c0_20, %c0_21] : memref<2x1xf32, #tpu.memory_space<vmem>>, vector<2x1xf32>
    %28 = vector.broadcast %27 : vector<2x1xf32> to vector<2x128xf32>
    %29 = arith.addf %26, %28 : vector<2x128xf32>
    %c0_22 = arith.constant 0 : index
    %c0_23 = arith.constant 0 : index
    %30 = vector.load %arg9[%c0_22, %c0_23] : memref<2x128xf32, #tpu.memory_space<vmem>>, vector<2x128xf32>
    tpu.vector_store %arg9[%c0_22, %c0_23], %29 {strides = array<i32>} : memref<2x128xf32, #tpu.memory_space<vmem>>, vector<2x128xf32>,
    return
  }
  func.func @transform_0(%arg0: i32) -> i32 {
    %c0_i32 = arith.constant 0 : i32
    %c0_i32_0 = arith.constant 0 : i32
    return %c0_i32 : i32
  }
  func.func @transform_1(%arg0: i32) -> (i32, i32) {
    %c0_i32 = arith.constant 0 : i32
    %c0_i32_0 = arith.constant 0 : i32
    return %c0_i32, %arg0 : i32, i32
  }
  func.func @transform_2(%arg0: i32) -> (i32, i32) {
    %c0_i32 = arith.constant 0 : i32
    %c0_i32_0 = arith.constant 0 : i32
    %c0_i32_1 = arith.constant 0 : i32
    return %c0_i32, %c0_i32_0 : i32, i32
  }
  func.func @transform_3(%arg0: i32) -> (i32, i32) {
    %c0_i32 = arith.constant 0 : i32
    %c0_i32_0 = arith.constant 0 : i32
    %c0_i32_1 = arith.constant 0 : i32
    return %c0_i32, %c0_i32_0 : i32, i32
  }
  func.func @transform_4(%arg0: i32) -> (i32, i32, i32) {
    %c0_i32 = arith.constant 0 : i32
    %c0_i32_0 = arith.constant 0 : i32
    %c0_i32_1 = arith.constant 0 : i32
    %c0_i32_2 = arith.constant 0 : i32
    return %c0_i32, %c0_i32_0, %c0_i32_1 : i32, i32, i32
  }
  func.func @transform_5(%arg0: i32) -> (i32, i32, i32) {
    %c0_i32 = arith.constant 0 : i32
    %c0_i32_0 = arith.constant 0 : i32
    %c0_i32_1 = arith.constant 0 : i32
    %c0_i32_2 = arith.constant 0 : i32
    return %c0_i32, %c0_i32_0, %c0_i32_1 : i32, i32, i32
  }
  func.func @transform_6(%arg0: i32) -> (i32, i32) {
    %c0_i32 = arith.constant 0 : i32
    %c0_i32_0 = arith.constant 0 : i32
    %c0_i32_1 = arith.constant 0 : i32
    return %c0_i32, %c0_i32_0 : i32, i32
  }
  func.func @transform_7(%arg0: i32) -> (i32, i32) {
    %c0_i32 = arith.constant 0 : i32
    %c0_i32_0 = arith.constant 0 : i32
    %c0_i32_1 = arith.constant 0 : i32
    return %c0_i32, %c0_i32_0 : i32, i32
  }
  func.func @transform_8(%arg0: i32) -> (i32, i32) {
    %c0_i32 = arith.constant 0 : i32
    %c0_i32_0 = arith.constant 0 : i32
    return %c0_i32, %arg0 : i32, i32
  }
}

</mosaic_0001>

<bundles_post_ra>
// kernel: tpu_custom_call.1
= control target key start
LH: loop header
LB: loop body
LE: loop exit
PB: predicated region body
PF: predicated region fallthrough
CT: control target
= control target key end

     0   :  { %13 = vsyncpa [#allocation4], 0  ;;  %s793_s0 = inlined_call_operand.vmem [shape: f32[4], index: 0, kind: input, shape index: {}]   ;;  %s794_s1 = inlined_call_operand.vmem [shape: f32[1,128], index: 1, kind: input, shape index: {}]   ;;  %s795_s2 = inlined_call_operand.vmem [shape: f32[32,1], index: 2, kind: input, shape index: {}]   ;;  %s796_s3 = inlined_call_operand.vmem [shape: f32[32,1], index: 3, kind: input, shape index: {}]   ;;  %s797_s4 = inlined_call_operand.vmem [shape: f32[2,32,32], index: 4, kind: input, shape index: {}]   ;;  %s798_s5 = inlined_call_operand.vmem [shape: f32[2,32,1], index: 5, kind: input, shape index: {}]   ;;  %s799_s6 = inlined_call_operand.vmem [shape: f32[2,32], index: 6, kind: input, shape index: {}]   ;;  %s800_s7 = inlined_call_operand.vmem [shape: f32[2,1], index: 7, kind: input, shape index: {}]   ;;  %s801_s8 = inlined_call_operand.hbm [shape: f32[2,128], index: 8, kind: output, shape index: {}]  }
   0x1   :  { %14 = vsyncpa [#allocation3], 0  ;;  %s21_s29 = sshll.u32 %s793_s0, 4  ;;  %s22_s29 = int_to_ptr.vmem [resolvable:$true] %s21_s29 }
   0x2   :  { %s599_s30 = scalar_lea.vmem %s22_s29, 16  ;;  %p604_p1 = scmp.lt.s32.totalorder %s22_s29, %s22_s29 }
   0x3   :  { %p600_p0 = scmp.ne.s32.totalorder %s22_s29, %s599_s30  ;;  %p605_p2 = scmp.lt.s32.totalorder %s599_s30, %s599_s30 }
   0x5   :  { %p606_p3 = por %p605_p2, %p604_p1 }
   0x7   :  { %p607_p4 = pnand %p606_p3, %p600_p0 }
   0x9   :  { %610 = shalt.err (!%p607_p4)
}
   0xa   :  { %s637_s9 = smov [#allocation2]  }
   0xb   :  { %24 = dma.vmem_to_smem %s22_s29, 16, %s637_s9, [#allocation4]  }
   0xc   :  { %633 = dma.done.wait [#allocation4], 16  }
   0xd   :  { %634 = vsyncadd [#allocation4], 4294967280 }
   0xe   :  { %42 = sfence }
   0xf   :  { %v78_v0 = vld [vmem:[%s796_s3] sm:$0xff]  ;;  %v638_v2 = vmov 0   ;;  %v79_v3 = vld [vmem:[%s796_s3 + $0x8] sm:$0xff]  ;;  %v47_v5 = vld [vmem:[%s795_s2 + $0x18] sm:$0xff]  ;;  %vm138_vm0 = vcmask 261120   ;;  %vm640_vm1 = vmmov 0  }
  0x10   :  { %v44_v1 = vld [vmem:[%s795_s2] sm:$0xff]  ;;  %574 = vset.pattern.permute.xlu1 %v638_v2  ;;  %573 = vset.pattern.permute.xlu0 %v638_v2  ;;  %v45_v4 = vld [vmem:[%s795_s2 + $0x8] sm:$0xff]  ;;  %v46_v6 = vld [vmem:[%s795_s2 + $0x10] sm:$0xff]  ;;  %s642_s10 = smov [#allocation5]  }
  0x11   :  { %84 = vperm.xlu1 %574, %v78_v0   ;;  %50 = vperm.xlu0 %573, %v44_v1   ;;  %v81_v7 = vld [vmem:[%s796_s3 + $0x18] sm:$0xff]  ;;  %v80_v8 = vld [vmem:[%s796_s3 + $0x10] sm:$0xff]  ;;  %v115_v9 = vld [vmem:[%s798_s5 + $0x8] sm:$0xff]  ;;  %s458_s11 = sshll.u32 %s642_s10, 4  ;;  %s459_s11 = int_to_ptr.vmem [resolvable:$true] %s458_s11 }
  0x12   :  { %v114_v10 = vld [vmem:[%s798_s5] sm:$0xff]  ;;  %v117_v11 = vld [vmem:[%s798_s5 + $0x18] sm:$0xff]  ;;  %v116_v12 = vld [vmem:[%s798_s5 + $0x10] sm:$0xff]  ;;  %s611_s12 = scalar_lea.vmem %s459_s11, 32  ;;  %p616_p6 = scmp.lt.s32.totalorder %s459_s11, %s459_s11 }
  0x13   :  { %v477_v13 = vld [vmem:[%s798_s5 + $0x28] sm:$0xff]  ;;  %v476_v14 = vld [vmem:[%s798_s5 + $0x20] sm:$0xff]  ;;  %v479_v15 = vld [vmem:[%s798_s5 + $0x38] sm:$0xff]  ;;  %p612_p5 = scmp.ne.s32.totalorder %s459_s11, %s611_s12  ;;  %p617_p7 = scmp.lt.s32.totalorder %s611_s12, %s611_s12 }
  0x14   :  { %v478_v16 = vld [vmem:[%s798_s5 + $0x30] sm:$0xff]  ;;  %v372_v17 = vld [vmem:[%s800_s7] sm:$0x3]  ;;  %v111_v42 = vld [vmem:[%s797_s4 + $0x8] sm:$0xff] }
  0x15   :  { %89 = vperm.xlu1 %574, %v79_v3   ;;  %55 = vperm.xlu0 %573, %v45_v4   ;;  %v110_v18 = vld [vmem:[%s797_s4] sm:$0xff]  ;;  %v112_v43 = vld [vmem:[%s797_s4 + $0x10] sm:$0xff]  ;;  %v113_v44 = vld [vmem:[%s797_s4 + $0x18] sm:$0xff]  ;;  %v639_v3 = vmov 0.0|0.0   ;;  %v641_v4 = vmov 0.0   ;;  %p618_p8 = por %p617_p7, %p616_p6 }
  0x16   :  { %514 = vmatprep.mubr.msk.f32.mxu0 %vm138_vm0, %v110_v18  ;;  %v467_v19 = vld [vmem:[%s794_s1] ss:$0 sm:$0xff]  ;;  %v473_v0 = vld [vmem:[%s797_s4 + $0x28] sm:$0xff]  ;;  %v474_v1 = vld [vmem:[%s797_s4 + $0x30] sm:$0xff] }
  0x17   :  { %v472_v45 = vld [vmem:[%s797_s4 + $0x20] sm:$0xff]  ;;  %v475_v2 = vld [vmem:[%s797_s4 + $0x38] sm:$0xff]  ;;  %p619_p9 = pnand %p618_p8, %p612_p5 }
  0x18   :  { %528 = vmatprep.mubr.msk.f32.mxu1 %vm138_vm0, %v472_v45 }
  0x19   :  { %65 = vperm.xlu1 %574, %v47_v5   ;;  %60 = vperm.xlu0 %573, %v46_v6  }
  0x1d   :  { %99 = vperm.xlu1 %574, %v81_v7   ;;  %94 = vperm.xlu0 %573, %v80_v8  }
  0x21   :  { %125 = vperm.xlu1 %574, %v115_v9   ;;  %120 = vperm.xlu0 %573, %v114_v10  }
  0x25   :  { %135 = vperm.xlu1 %574, %v117_v11   ;;  %130 = vperm.xlu0 %573, %v116_v12  }
  0x29   :  { %257 = vperm.xlu1 %574, %v477_v13   ;;  %252 = vperm.xlu0 %573, %v476_v14  }
  0x2d   :  { %267 = vperm.xlu1 %574, %v479_v15   ;;  %262 = vperm.xlu0 %573, %v478_v16  }
  0x31   :  { %375 = vperm.xlu0 %573, %v372_v17  }
  0x90   :  { %v85_v20 = vpop.permute.xlu1 %84  ;;  %v51_v21 = vpop.permute.xlu0 %50 }
  0x91   :  { %v74_v22 = vmul.f32 %v467_v19, %v51_v21 }
  0x93   :  { %v102_v23 = vadd.f32 %v85_v20, %v74_v22 }
  0x94   :  { %v90_v24 = vpop.permute.xlu1 %89  ;;  %v56_v25 = vpop.permute.xlu0 %55 }
  0x95   :  { %v75_v26 = vmul.f32 %v467_v19, %v56_v25  ;;  %575 = vtanh.f32 %v102_v23  ;;  %v371_v23 = vld [vmem:[%s799_s6] sm:$0x3] }
  0x97   :  { %v103_v27 = vadd.f32 %v90_v24, %v75_v26 }
  0x98   :  { %v66_v28 = vpop.permute.xlu1 %65  ;;  %v61_v29 = vpop.permute.xlu0 %60 }
  0x99   :  { %577 = vtanh.f32 %v103_v27  ;;  %v77_v30 = vmul.f32 %v467_v19, %v66_v28  ;;  %v76_v31 = vmul.f32 %v467_v19, %v61_v29 }
  0x9c   :  { %v100_v32 = vpop.permute.xlu1 %99  ;;  %v95_v33 = vpop.permute.xlu0 %94 }
  0x9d   :  { %v105_v34 = vadd.f32 %v100_v32, %v77_v30  ;;  %v104_v35 = vadd.f32 %v95_v33, %v76_v31 }
  0x9f   :  { %579 = vtanh.f32 %v105_v34  ;;  %v576_v36 = vpop.eup %575 }
  0xa0   :  { %581 = vtanh.f32 %v104_v35  ;;  %v126_v46 = vpop.permute.xlu1 %125  ;;  %v121_v47 = vpop.permute.xlu0 %120 }
  0xa3   :  { %v578_v37 = vpop.eup %577 }
  0xa4   :  { %v545_v38 = vpack.c.bf16 %v578_v37, %v576_v36  ;;  %v136_v52 = vpop.permute.xlu1 %135  ;;  %v131_v54 = vpop.permute.xlu0 %130 }
  0xa6   :  { %546 = vmatprep.subr.bf16.mxu0 %v545_v38 }
  0xa7   :  { %548 = vmatpush3.bf16.msra.mxu0 %v545_v38 }
  0xa8   :  { %v258_v5 = vpop.permute.xlu1 %257  ;;  %v253_v6 = vpop.permute.xlu0 %252 }
  0xa9   :  { %v580_v39 = vpop.eup %579 }
  0xaa   :  { %v582_v40 = vpop.eup %581 }
  0xab   :  { %v549_v41 = vpack.c.bf16 %v580_v39, %v582_v40 }
  0xac   :  { %v268_v11 = vpop.permute.xlu1 %267  ;;  %v263_v13 = vpop.permute.xlu0 %262 }
  0xad   :  { %550 = vmatprep.subr.bf16.mxu0 %v549_v41 }
  0xae   :  { %552 = vmatpush3.bf16.msra.mxu0 %v549_v41 }
  0xaf   :  { %561 = vmatprep.subr.bf16.mxu0 %v639_v3 }
  0xb0   :  { %v376_v24 = vpop.permute.xlu0 %375 }
  0xb1   :  { %515 = vmatmul.mubr.msk.f32.vlgmr.msra.gmra.mrb[0].mxu0 %vm138_vm0, %v111_v42 }
  0xb2   :  { %517 = vmatprep.mubr.msk.f32.mxu0 %vm138_vm0, %v112_v43 }
  0xb5   :  { %518 = vmatmul.mubr.msk.f32.gmra.mrb[2].mxu0 %vm138_vm0, %v113_v44 }
  0xb6   :  { %542 = vmatprep.mubr.msk.f32.mxu0 %vm640_vm1, %v641_v4 }
 0x184   :  { %v516_v48 = vpop.f32.mrb[0].mxu0 }
 0x185   :  { %v223_v49 = vadd.f32 %v516_v48, %v126_v46  ;;  %v217_v50 = vpop.f32.mrb[1].mxu0 }
 0x186   :  { %v218_v51 = vadd.f32 %v217_v50, %v121_v47 }
 0x187   :  { %583 = vtanh.f32 %v223_v49 }
 0x188   :  { %585 = vtanh.f32 %v218_v51  ;;  %v519_v53 = vpop.f32.mrb[2].mxu0 }
 0x189   :  { %v233_v55 = vadd.f32 %v519_v53, %v136_v52  ;;  %v227_v56 = vpop.f32.mrb[3].mxu0 }
 0x18a   :  { %v228_v57 = vadd.f32 %v227_v56, %v131_v54 }
 0x18b   :  { %587 = vtanh.f32 %v233_v55 }
 0x18c   :  { %589 = vtanh.f32 %v228_v57 }
 0x191   :  { %v584_v58 = vpop.eup %583 }
 0x192   :  { %v586_v59 = vpop.eup %585 }
 0x193   :  { %v553_v60 = vpack.c.bf16 %v584_v58, %v586_v59 }
 0x195   :  { %v588_v61 = vpop.eup %587  ;;  %554 = vmatprep.subr.bf16.mxu1 %v553_v60 }
 0x196   :  { %v590_v62 = vpop.eup %589  ;;  %556 = vmatpush3.bf16.msra.mxu1 %v553_v60 }
 0x197   :  { %v557_v63 = vpack.c.bf16 %v588_v61, %v590_v62 }
 0x199   :  { %558 = vmatprep.subr.bf16.mxu1 %v557_v63 }
 0x19a   :  { %560 = vmatpush3.bf16.msra.mxu1 %v557_v63 }
 0x19d   :  { %529 = vmatmul.mubr.msk.f32.vlgmr.msra.gmra.mrb[0].mxu1 %vm138_vm0, %v473_v0 }
 0x19e   :  { %531 = vmatprep.mubr.msk.f32.mxu1 %vm138_vm0, %v474_v1 }
 0x1a1   :  { %532 = vmatmul.mubr.msk.f32.gmra.mrb[2].mxu1 %vm138_vm0, %v475_v2 }
 0x270   :  { %v530_v7 = vpop.f32.mrb[0].mxu1 }
 0x271   :  { %v354_v8 = vadd.f32 %v530_v7, %v258_v5  ;;  %v348_v9 = vpop.f32.mrb[1].mxu1 }
 0x272   :  { %v349_v10 = vadd.f32 %v348_v9, %v253_v6 }
 0x273   :  { %591 = vtanh.f32 %v354_v8 }
 0x274   :  { %593 = vtanh.f32 %v349_v10  ;;  %v533_v12 = vpop.f32.mrb[2].mxu1 }
 0x275   :  { %v364_v14 = vadd.f32 %v533_v12, %v268_v11  ;;  %v358_v15 = vpop.f32.mrb[3].mxu1 }
 0x276   :  { %v359_v16 = vadd.f32 %v358_v15, %v263_v13 }
 0x277   :  { %595 = vtanh.f32 %v364_v14 }
 0x278   :  { %597 = vtanh.f32 %v359_v16 }
 0x27d   :  { %v592_v17 = vpop.eup %591 }
 0x27e   :  { %v594_v18 = vpop.eup %593 }
 0x27f   :  { %v562_v19 = vpack.c.bf16 %v592_v17, %v594_v18 }
 0x281   :  { %v596_v20 = vpop.eup %595  ;;  %563 = vmatpush3.bf16.msra.mxu0 %v562_v19 }
 0x282   :  { %v598_v21 = vpop.eup %597  ;;  %564 = vmatprep.subr.bf16.mxu0 %v639_v3 }
 0x283   :  { %v565_v22 = vpack.c.bf16 %v596_v20, %v598_v21 }
 0x285   :  { %566 = vmatpush3.bf16.msra.mxu0 %v565_v22 }
 0x288   :  { %543 = vmatmul.mubr.msk.f32.vlgmr.msra.gmra.mrb[4].mxu0 %vm138_vm0, %v371_v23 }
 0x35b   :  { %v447_v25 = vpop.f32.mrb[4].mxu0 }
 0x35c   :  { %v448_v26 = vadd.f32 %v447_v25, %v376_v24  ;;  %v544_v27 = vpop.f32.mrb[5].mxu0 }
 0x35e   :  { %451 = vst [vmem:[#allocation5] sm:$0x3] %v448_v26 }
 0x35f   :  { %622 = shalt.err (!%p619_p9)
}
 0x360   :  { %s623_s6 = scalar_lea.hbm %s801_s8, 32 }
 0x361   :  { %p624_p10 = scmp.ne.s32.totalorder %s801_s8, %s623_s6  ;;  %p627_p11 = scmp.lt.u32.totalorder %s623_s6, %s801_s8 }
 0x363   :  { %p629_p12 = pnand %p627_p11, %p624_p10 }
 0x365   :  { %632 = shalt.err (!%p629_p12)
}
 0x366   :  { %461 = dma.vmem_to_hbm [thread:$0]  %s459_s11, 32, %s801_s8, [#allocation3]  }
 0x367   :  { %635 = dma.done.wait [#allocation3], 32  }
 0x368   :  { %636 = vsyncadd [#allocation3], 4294967264 }
 0x369   :  { %465 = vsyncpa [#allocation3], 1 }
 0x36a   :  { %466 = vsyncpa [#allocation4], 1 }

</bundles_post_ra>
